<compile_context>
chip_gen: v5e
topology: v5e:2x2
jax: 0.10.0
libtpu: 0.0.40
codegen_flags: <defaults>
</compile_context>

<pallas_src>
import functools

import jax
import jax.numpy as jnp
import numpy as np
from jax.experimental import pallas as pl
from jax.experimental.pallas import tpu as pltpu


F_PAD = 128   # conv filters padded to a full lane tile (real: 100)
C_PAD = 128   # output classes padded to a full lane tile (real: 2)


def _round_up(x, m):
    return ((x + m - 1) // m) * m


def _cnn_kernel(tok_ref, m_ref, bconv_ref, wfc_ref, bfc_ref, out_ref, *,
                seq_len, tile_b, v_pad):
    """One batch tile: fused one-hot gather+conv -> ReLU -> max-pool -> FC."""
    L = seq_len
    Lo = L - 2
    rows = tile_b * L

    # tok_ref holds, per flattened (b, l) row, the token ids at offsets 0/1/2.
    toks = tok_ref[...]                                            # (rows, 3) i32

    # tri-hot LHS: one-hot of token[l+t] in lane block t (t = 0, 1, 2).
    iota_v = jax.lax.broadcasted_iota(jnp.int32, (rows, v_pad), 1)
    tri_hot = jnp.concatenate(
        [(toks[:, t:t + 1] == iota_v).astype(jnp.bfloat16) for t in range(3)],
        axis=1)                                                    # (rows, 3*v_pad)

    # Single fused MXU matmul = embedding gather + full-width (3, D) conv.
    conv = jnp.dot(tri_hot, m_ref[...],
                   preferred_element_type=jnp.float32)             # (rows, 128) f32
    act = jnp.maximum(conv + bconv_ref[...], 0.0)

    # Rows with l >= Lo have no full conv window; zero them (ReLU output >= 0,
    # so padding with 0 never changes the per-sequence max).
    pos = jax.lax.broadcasted_iota(jnp.int32, (rows, F_PAD), 0) % L
    act = jnp.where(pos < Lo, act, 0.0)

    # max_pool1d over the sequence positions of each batch row.
    pooled = jnp.max(act.reshape(tile_b, L, F_PAD), axis=1)        # (tile_b, 128)

    # dropout: identity at inference time.
    # TODO(synk): training-mode dropout (random mask) not implemented.

    logits = jnp.dot(pooled.astype(jnp.bfloat16), wfc_ref[...],
                     preferred_element_type=jnp.float32) + bfc_ref[...]
    out_ref[...] = logits.astype(out_ref.dtype)                    # lane-dense store


def cnn_forward(tokens, embed_table, conv_w, conv_b, fc_w, fc_b):
    """tokens: (B, L) int; returns logits (B, 2) float32."""
    tokens = tokens.astype(jnp.int32)
    B, L = tokens.shape
    V, D = embed_table.shape
    nf = conv_w.shape[0]      # 100
    nc = fc_w.shape[0]        # 2
    assert L >= 3, "conv window (3, D) needs L >= 3"
    assert nf <= F_PAD and nc <= C_PAD

    V_pad = _round_up(V, 128)
    # The one-hot fold keeps the (3*V_pad, 128) folded weights VMEM-resident;
    # only viable for small vocabularies (fine here: V = 50).
    assert 3 * V_pad * F_PAD * 2 <= (8 << 20), "vocab too large for one-hot fold"
    # TODO(synk): for large vocabularies fall back to a double-buffered HBM
    # embedding gather instead of folding the table into the conv weights.

    # --- batch tiling: biggest aligned tile that keeps the tri-hot LHS small.
    b8 = _round_up(B, 8)
    TB = 8
    for cand in (128, 64, 32, 16, 8):
        if cand <= b8 and cand * L * 3 * V_pad * 2 <= (8 << 20):
            TB = cand
            break
    B_pad = _round_up(B, TB)

    # --- tokens: pad batch, build the three shifted columns (tap offsets 0/1/2).
    tok = jnp.zeros((B_pad, L), jnp.int32).at[:B].set(tokens)
    t1 = jnp.concatenate([tok[:, 1:], jnp.zeros((B_pad, 1), jnp.int32)], axis=1)
    t2 = jnp.concatenate([tok[:, 2:], jnp.zeros((B_pad, 2), jnp.int32)], axis=1)
    toks3 = jnp.stack([tok, t1, t2], axis=-1).reshape(B_pad * L, 3)

    # --- fold the embedding table into the conv taps: M[t] = table @ W_t.
    w3 = conv_w.reshape(nf, 3, D).astype(jnp.float32)              # (nf, 3, D)
    m = jnp.einsum('vd,ftd->tvf', embed_table.astype(jnp.float32), w3)  # (3, V, nf)
    m = jnp.pad(m, ((0, 0), (0, V_pad - V), (0, F_PAD - nf)))
    m = m.reshape(3 * V_pad, F_PAD).astype(jnp.bfloat16)           # (3*V_pad, 128)

    bconv = jnp.pad(conv_b.astype(jnp.float32),
                    (0, F_PAD - nf)).reshape(1, F_PAD)             # (1, 128)

    # FC padded to a lane-dense (128, 128) bf16 matmul; extra rows/cols zero.
    wfc = jnp.zeros((F_PAD, C_PAD), jnp.float32).at[
        :nf, :nc].set(fc_w.T.astype(jnp.float32)).astype(jnp.bfloat16)
    bfc = jnp.zeros((1, C_PAD), jnp.float32).at[0, :nc].set(
        fc_b.astype(jnp.float32))

    kernel = functools.partial(_cnn_kernel, seq_len=L, tile_b=TB, v_pad=V_pad)

    grid_spec = pltpu.PrefetchScalarGridSpec(
        num_scalar_prefetch=0,
        grid=(B_pad // TB,),
        in_specs=[
            pl.BlockSpec((TB * L, 3), lambda i: (i, 0)),            # shifted tokens
            pl.BlockSpec((3 * V_pad, F_PAD), lambda i: (0, 0)),     # folded conv (resident)
            pl.BlockSpec((1, F_PAD), lambda i: (0, 0)),             # conv bias
            pl.BlockSpec((F_PAD, C_PAD), lambda i: (0, 0)),         # fc weight (bf16)
            pl.BlockSpec((1, C_PAD), lambda i: (0, 0)),             # fc bias
        ],
        out_specs=pl.BlockSpec((TB, C_PAD), lambda i: (i, 0)),
    )

    out_padded = pl.pallas_call(
        kernel,
        out_shape=jax.ShapeDtypeStruct((B_pad, C_PAD), jnp.float32),
        grid_spec=grid_spec,
        compiler_params=pltpu.CompilerParams(
            dimension_semantics=("parallel",),     # batch tiles -> v7x megacore
            vmem_limit_bytes=32 * 1024 * 1024,     # safe on v5e/v6e/v7x
        ),
    )(toks3, m, bconv, wfc, bfc)

    return out_padded[:B, :nc]


def _reference_forward(tokens, embed_table, conv_w, conv_b, fc_w, fc_b):
    """Pure-JAX reference mirroring the kernel's bf16 weight quantization."""
    B, L = tokens.shape
    V, D = embed_table.shape
    nf = conv_w.shape[0]
    Lo = L - 2
    w3 = conv_w.reshape(nf, 3, D).astype(jnp.float32)
    m = jnp.einsum('vd,ftd->tvf', embed_table.astype(jnp.float32), w3)
    m = m.astype(jnp.bfloat16).astype(jnp.float32)                 # (3, V, nf)
    g = m[:, tokens, :]                                            # (3, B, L, nf)
    conv = (g[0, :, 0:Lo] + g[1, :, 1:Lo + 1] + g[2, :, 2:Lo + 2]
            + conv_b[None, None, :])
    act = jnp.maximum(conv, 0.0)
    pooled = jnp.max(act, axis=1)                                  # (B, nf)
    pooled = pooled.astype(jnp.bfloat16).astype(jnp.float32)
    wfc = fc_w.T.astype(jnp.bfloat16).astype(jnp.float32)
    return pooled @ wfc + fc_b[None, :]


if __name__ == "__main__":
    # Small, deterministic configuration consistent with the module.
    V, D = 50, 32            # embed_num, embed_dim
    B, L = 16, 8             # batch, sequence length
    n_filters, n_classes = 100, 2

    key = jax.random.PRNGKey(0)
    k_emb, k_conv, k_fc, k_tok = jax.random.split(key, 4)

    embed_table = jax.random.normal(k_emb, (V, D), dtype=jnp.float32)
    # conv.weight: xavier_normal-style init; conv.bias = 0.1
    fan_in, fan_out = 3 * D, n_filters
    xavier_std = float(np.sqrt(2.0 / (fan_in + fan_out)))
    conv_w = xavier_std * jax.random.normal(
        k_conv, (n_filters, 1, 3, D), dtype=jnp.float32)
    conv_b = jnp.full((n_filters,), 0.1, dtype=jnp.float32)
    # fc.weight: standard normal; fc.bias = 0.1
    fc_w = jax.random.normal(k_fc, (n_classes, n_filters), dtype=jnp.float32)
    fc_b = jnp.full((n_classes,), 0.1, dtype=jnp.float32)

    tokens = jax.random.randint(k_tok, (B, L), 0, V, dtype=jnp.int32)

    out = cnn_forward(tokens, embed_table, conv_w, conv_b, fc_w, fc_b)
    out = jax.block_until_ready(out)

    ref = _reference_forward(tokens, embed_table, conv_w, conv_b, fc_w, fc_b)
    np.testing.assert_allclose(np.asarray(out), np.asarray(ref),
                               rtol=2e-3, atol=2e-3)

    print("KERNEL_OK")
</pallas_src>

<mosaic_0001>
module attributes {stable_mosaic.version = 11 : i64} {
  func.func @_cnn_kernel(%arg0: i32, %arg1: memref<128x3xi32, #tpu.memory_space<vmem>>, %arg2: memref<384x128xbf16, #tpu.memory_space<vmem>>, %arg3: memref<1x128xf32, #tpu.memory_space<vmem>>, %arg4: memref<128x128xbf16, #tpu.memory_space<vmem>>, %arg5: memref<1x128xf32, #tpu.memory_space<vmem>>, %arg6: memref<16x128xf32, #tpu.memory_space<vmem>>) attributes {dimension_semantics = [#tpu.dimension_semantics<parallel>], iteration_bounds = array<i64: 1>, scalar_prefetch = 0 : i64, scratch_operands = 0 : i64, tpu.core_type = #tpu.core_type<tc>, window_params = [{transform_indices = @transform_0, window_bounds = array<i64: 128, 3>}, {pipeline_mode = #tpu.pipeline_mode<synchronous>, transform_indices = @transform_1, window_bounds = array<i64: 384, 128>}, {pipeline_mode = #tpu.pipeline_mode<synchronous>, transform_indices = @transform_2, window_bounds = array<i64: 1, 128>}, {pipeline_mode = #tpu.pipeline_mode<synchronous>, transform_indices = @transform_3, window_bounds = array<i64: 128, 128>}, {pipeline_mode = #tpu.pipeline_mode<synchronous>, transform_indices = @transform_4, window_bounds = array<i64: 1, 128>}, {transform_indices = @transform_5, window_bounds = array<i64: 16, 128>}]} {
    %c0 = arith.constant 0 : index
    %c0_0 = arith.constant 0 : index
    %0 = vector.load %arg1[%c0, %c0_0] : memref<128x3xi32, #tpu.memory_space<vmem>>, vector<128x3xi32>
    %1 = tpu.iota {dimensions = array<i32: 1>} : vector<128x128xi32>
    %2 = vector.extract_strided_slice %0 {offsets = [0, 0], sizes = [128, 1], strides = [1, 1]} : vector<128x3xi32> to vector<128x1xi32>
    %3 = vector.broadcast %2 : vector<128x1xi32> to vector<128x128xi32>
    %4 = arith.cmpi eq, %3, %1 : vector<128x128xi32>
    %5 = arith.extui %4 : vector<128x128xi1> to vector<128x128xi32>
    %6 = arith.sitofp %5 : vector<128x128xi32> to vector<128x128xf32>
    %7 = arith.truncf %6 : vector<128x128xf32> to vector<128x128xbf16>
    %8 = vector.extract_strided_slice %0 {offsets = [0, 1], sizes = [128, 1], strides = [1, 1]} : vector<128x3xi32> to vector<128x1xi32>
    %9 = vector.broadcast %8 : vector<128x1xi32> to vector<128x128xi32>
    %10 = arith.cmpi eq, %9, %1 : vector<128x128xi32>
    %11 = arith.extui %10 : vector<128x128xi1> to vector<128x128xi32>
    %12 = arith.sitofp %11 : vector<128x128xi32> to vector<128x128xf32>
    %13 = arith.truncf %12 : vector<128x128xf32> to vector<128x128xbf16>
    %14 = vector.extract_strided_slice %0 {offsets = [0, 2], sizes = [128, 1], strides = [1, 1]} : vector<128x3xi32> to vector<128x1xi32>
    %15 = vector.broadcast %14 : vector<128x1xi32> to vector<128x128xi32>
    %16 = arith.cmpi eq, %15, %1 : vector<128x128xi32>
    %17 = arith.extui %16 : vector<128x128xi1> to vector<128x128xi32>
    %18 = arith.sitofp %17 : vector<128x128xi32> to vector<128x128xf32>
    %19 = arith.truncf %18 : vector<128x128xf32> to vector<128x128xbf16>
    %20 = tpu.concatenate %7, %13, %19 in 1 : vector<128x128xbf16>, vector<128x128xbf16>, vector<128x128xbf16> -> vector<128x384xbf16>
    %c0_1 = arith.constant 0 : index
    %c0_2 = arith.constant 0 : index
    %21 = vector.load %arg2[%c0_1, %c0_2] : memref<384x128xbf16, #tpu.memory_space<vmem>>, vector<384x128xbf16>
    %cst = arith.constant dense<0.000000e+00> : vector<128x128xf32>
    %22 = tpu.matmul %20, %21, %cst {dimension_numbers = #tpu.dot_dimension_numbers<[1], [0], [0], [1], [0, 0, 1, 1], [], []>} : vector<128x384xbf16>, vector<384x128xbf16>, vector<128x128xf32> -> vector<128x128xf32>
    %c0_3 = arith.constant 0 : index
    %c0_4 = arith.constant 0 : index
    %23 = vector.load %arg3[%c0_3, %c0_4] : memref<1x128xf32, #tpu.memory_space<vmem>>, vector<1x128xf32>
    %24 = vector.broadcast %23 : vector<1x128xf32> to vector<128x128xf32>
    %25 = arith.addf %22, %24 : vector<128x128xf32>
    %cst_5 = arith.constant 0.000000e+00 : f32
    %26 = vector.broadcast %cst_5 : f32 to vector<128x128xf32>
    %27 = arith.maximumf %25, %26 : vector<128x128xf32>
    %28 = tpu.iota {dimensions = array<i32: 0>} : vector<128x128xi32>
    %c8_i32 = arith.constant 8 : i32
    %c0_i32 = arith.constant 0 : i32
    %29 = arith.cmpi eq, %c8_i32, %c0_i32 : i32
    %c1_i32 = arith.constant 1 : i32
    %30 = arith.select %29, %c1_i32, %c8_i32 : i32
    %31 = vector.broadcast %30 : i32 to vector<128x128xi32>
    %32 = arith.remsi %28, %31 : vector<128x128xi32>
    %c0_i32_6 = arith.constant 0 : i32
    %33 = vector.broadcast %c0_i32_6 : i32 to vector<128x128xi32>
    %34 = arith.cmpi ne, %32, %33 : vector<128x128xi32>
    %c0_i32_7 = arith.constant 0 : i32
    %35 = vector.broadcast %c0_i32_7 : i32 to vector<128x128xi32>
    %36 = arith.cmpi slt, %32, %35 : vector<128x128xi32>
    %c0_i32_8 = arith.constant 0 : i32
    %37 = arith.cmpi slt, %30, %c0_i32_8 : i32
    %38 = vector.broadcast %37 : i1 to vector<128x128xi1>
    %39 = vector.broadcast %38 : vector<128x128xi1> to vector<128x128xi1>
    %40 = arith.xori %36, %39 : vector<128x128xi1>
    %41 = arith.andi %40, %34 : vector<128x128xi1>
    %42 = vector.broadcast %30 : i32 to vector<128x128xi32>
    %43 = arith.addi %32, %42 : vector<128x128xi32>
    %44 = arith.select %41, %43, %32 : vector<128x128xi1>, vector<128x128xi32>
    %c6_i32 = arith.constant 6 : i32
    %45 = vector.broadcast %c6_i32 : i32 to vector<128x128xi32>
    %46 = arith.cmpi slt, %44, %45 : vector<128x128xi32>
    %cst_9 = arith.constant 0.000000e+00 : f32
    %47 = vector.broadcast %cst_9 : f32 to vector<128x128xf32>
    %48 = arith.select %46, %27, %47 : vector<128x128xi1>, vector<128x128xf32>
    %49 = vector.shape_cast %48 : vector<128x128xf32> to vector<16x8x128xf32>
    %cst_10 = arith.constant dense<0xFF800000> : vector<16x128xf32>
    %50 = vector.multi_reduction <maximumf>, %49, %cst_10 [1] : vector<16x8x128xf32> to vector<16x128xf32>
    %51 = arith.truncf %50 : vector<16x128xf32> to vector<16x128xbf16>
    %c0_11 = arith.constant 0 : index
    %c0_12 = arith.constant 0 : index
    %52 = vector.load %arg4[%c0_11, %c0_12] : memref<128x128xbf16, #tpu.memory_space<vmem>>, vector<128x128xbf16>
    %cst_13 = arith.constant dense<0.000000e+00> : vector<16x128xf32>
    %53 = tpu.matmul %51, %52, %cst_13 {dimension_numbers = #tpu.dot_dimension_numbers<[1], [0], [0], [1], [0, 0, 1, 1], [], []>} : vector<16x128xbf16>, vector<128x128xbf16>, vector<16x128xf32> -> vector<16x128xf32>
    %c0_14 = arith.constant 0 : index
    %c0_15 = arith.constant 0 : index
    %54 = vector.load %arg5[%c0_14, %c0_15] : memref<1x128xf32, #tpu.memory_space<vmem>>, vector<1x128xf32>
    %55 = vector.broadcast %54 : vector<1x128xf32> to vector<16x128xf32>
    %56 = arith.addf %53, %55 : vector<16x128xf32>
    %c0_16 = arith.constant 0 : index
    %c0_17 = arith.constant 0 : index
    %57 = vector.load %arg6[%c0_16, %c0_17] : memref<16x128xf32, #tpu.memory_space<vmem>>, vector<16x128xf32>
    tpu.vector_store %arg6[%c0_16, %c0_17], %56 {strides = array<i32>} : memref<16x128xf32, #tpu.memory_space<vmem>>, vector<16x128xf32>,
    return
  }
  func.func @transform_0(%arg0: i32) -> (i32, i32) {
    %c0_i32 = arith.constant 0 : i32
    %c0_i32_0 = arith.constant 0 : i32
    return %arg0, %c0_i32 : i32, i32
  }
  func.func @transform_1(%arg0: i32) -> (i32, i32) {
    %c0_i32 = arith.constant 0 : i32
    %c0_i32_0 = arith.constant 0 : i32
    %c0_i32_1 = arith.constant 0 : i32
    return %c0_i32, %c0_i32_0 : i32, i32
  }
  func.func @transform_2(%arg0: i32) -> (i32, i32) {
    %c0_i32 = arith.constant 0 : i32
    %c0_i32_0 = arith.constant 0 : i32
    %c0_i32_1 = arith.constant 0 : i32
    return %c0_i32, %c0_i32_0 : i32, i32
  }
  func.func @transform_3(%arg0: i32) -> (i32, i32) {
    %c0_i32 = arith.constant 0 : i32
    %c0_i32_0 = arith.constant 0 : i32
    %c0_i32_1 = arith.constant 0 : i32
    return %c0_i32, %c0_i32_0 : i32, i32
  }
  func.func @transform_4(%arg0: i32) -> (i32, i32) {
    %c0_i32 = arith.constant 0 : i32
    %c0_i32_0 = arith.constant 0 : i32
    %c0_i32_1 = arith.constant 0 : i32
    return %c0_i32, %c0_i32_0 : i32, i32
  }
  func.func @transform_5(%arg0: i32) -> (i32, i32) {
    %c0_i32 = arith.constant 0 : i32
    %c0_i32_0 = arith.constant 0 : i32
    return %arg0, %c0_i32 : i32, i32
  }
}

</mosaic_0001>

<bundles_post_ra>
// kernel: tpu_custom_call.1
= control target key start
LH: loop header
LB: loop body
LE: loop exit
PB: predicated region body
PF: predicated region fallthrough
CT: control target
= control target key end

     0   :  { %10 = vsyncpa [#allocation3], 0  ;;  %s2059_s0 = inlined_call_operand.vmem [shape: s32[128,3], index: 0, kind: input, shape index: {}]   ;;  %s2060_s1 = inlined_call_operand.hbm [shape: bf16[384,128], index: 1, kind: input, shape index: {}]   ;;  %s2061_s2 = inlined_call_operand.vmem [shape: f32[1,128], index: 2, kind: input, shape index: {}]   ;;  %s2062_s3 = inlined_call_operand.vmem [shape: bf16[128,128], index: 3, kind: input, shape index: {}]   ;;  %s2063_s4 = inlined_call_operand.vmem [shape: f32[1,128], index: 4, kind: input, shape index: {}]   ;;  %s2064_s5 = inlined_call_operand.hbm [shape: f32[16,128], index: 5, kind: output, shape index: {}]  }
   0x1   :  { %11 = vsyncpa [#allocation4], 0  ;;  %s18_s20 = sshll.u32 %s2060_s1, 4  ;;  %s1717_s21 = smov [#allocation2]   ;;  %s19_s20 = int_to_ptr.hbm [resolvable:$true] %s18_s20 }
   0x2   :  { %s20_s22 = sshll.u32 %s1717_s21, 4  ;;  %s1718_s23 = smov 64   ;;  %s21_s22 = int_to_ptr.vmem [resolvable:$true] %s20_s22 }
   0x3   :  { %s1719_s24 = smov 4  }
   0x4   :  { %26 = dma.hbm_to_vmem [thread:$0]  %s19_s20, 3072, %s21_s22, [#allocation3], %s1718_s23, %s1718_s23, %s1719_s24  }
   0x5   :  { %1713 = dma.done.wait [#allocation3], 3072  }
   0x6   :  { %1714 = vsyncadd [#allocation3], 4294964224  ;;  %v1720_v0 = vmov 2   ;;  %v1721_v1 = vmov 0   ;;  %v1722_v2 = vmov 1   ;;  %v37_v3 = vld [vmem:[%s2059_s0] sm:$0xff]  ;;  %v53_v33 = vlaneseq }
   0x7   :  { %1623 = vset.pattern.permute.xlu0 %v1720_v0  ;;  %1624 = vset.pattern.permute.xlu1 %v1721_v1  ;;  %v38_v4 = vld [vmem:[%s2059_s0 + $0x8] sm:$0xff]  ;;  %v39_v5 = vld [vmem:[%s2059_s0 + $0x10] sm:$0xff]  ;;  %v40_v6 = vld [vmem:[%s2059_s0 + $0x18] sm:$0xff]  ;;  %v1723_v42 = vmov 0.0   ;;  %s1724_s22 = smov [#allocation5]   ;;  %s1392_s1 = sshll.u32 %s2064_s5, 4  ;;  %s1393_s1 = int_to_ptr.hbm [resolvable:$true] %s1392_s1 }
   0x8   :  { %1625 = vset.pattern.permute.xlu2 %v1722_v2  ;;  %56 = vperm.xlu1 %1624, %v37_v3   ;;  %v41_v7 = vld [vmem:[%s2059_s0 + $0x20] sm:$0xff]  ;;  %v42_v8 = vld [vmem:[%s2059_s0 + $0x28] sm:$0xff]  ;;  %v43_v9 = vld [vmem:[%s2059_s0 + $0x30] sm:$0xff]  ;;  %v1837_v37 = vand.u32 127, %v53_v33  ;;  %s1390_s23 = sshll.u32 %s1724_s22, 4  ;;  %s1725_s26 = smov 128   ;;  %s1391_s23 = int_to_ptr.vmem [resolvable:$true] %s1390_s23 }
   0x9   :  { %280 = vperm.xlu0 %1623, %v37_v3   ;;  %168 = vperm.xlu2 %1625, %v37_v3   ;;  %v44_v10 = vld [vmem:[%s2059_s0 + $0x38] sm:$0xff]  ;;  %v1802_v11 = vld [vmem:[%s2059_s0 + $0x48] sm:$0xff]  ;;  %v1595_v13 = vld [vmem:[#allocation2 + $0x70] sm:$0xff]  ;;  %s1726_s27 = smov 8  }
   0xa   :  { %v1596_v12 = vld [vmem:[#allocation2 + $0x78] sm:$0xff]  ;;  %v1811_v14 = vld [vmem:[%s2059_s0 + $0x50] sm:$0xff]  ;;  %v1594_v15 = vld [vmem:[#allocation2 + $0x68] sm:$0xff] }
   0xb   :  { %780 = vmatpush.bf16.msra.mxu1 %v1596_v12  ;;  %v1588_v16 = vld [vmem:[#allocation2 + $0x38] sm:$0xff]  ;;  %v1593_v18 = vld [vmem:[#allocation2 + $0x60] sm:$0xff]  ;;  %v1587_v19 = vld [vmem:[#allocation2 + $0x30] sm:$0xff] }
   0xc   :  { %v1604_v17 = vld [vmem:[#allocation2 + $0xb8] sm:$0xff]  ;;  %731 = vmatpush.bf16.msra.mxu0 %v1588_v16  ;;  %v1603_v20 = vld [vmem:[#allocation2 + $0xb0] sm:$0xff]  ;;  %v45_v21 = vld [vmem:[%s2059_s0 + $0x40] sm:$0xff] }
   0xd   :  { %829 = vmatpush.bf16.msra.mxu2 %v1604_v17  ;;  %v1822_v22 = vld [vmem:[%s2059_s0 + $0x58] sm:$0xff]  ;;  %v1586_v24 = vld [vmem:[#allocation2 + $0x28] sm:$0xff]  ;;  %v1591_v26 = vld [vmem:[#allocation2 + $0x50] sm:$0xff] }
   0xe   :  { %v1592_v23 = vld [vmem:[#allocation2 + $0x58] sm:$0xff]  ;;  %v1602_v25 = vld [vmem:[#allocation2 + $0xa8] sm:$0xff]  ;;  %v1585_v27 = vld [vmem:[#allocation2 + $0x20] sm:$0xff] }
   0xf   :  { %781 = vmatpush.bf16.msra.mxu1 %v1595_v13  ;;  %v1601_v28 = vld [vmem:[#allocation2 + $0xa0] sm:$0xff]  ;;  %v1590_v29 = vld [vmem:[#allocation2 + $0x48] sm:$0xff]  ;;  %v1584_v31 = vld [vmem:[#allocation2 + $0x18] sm:$0xff] }
  0x10   :  { %59 = vperm.xlu1 %1624, %v38_v4   ;;  %732 = vmatpush.bf16.msra.mxu0 %v1587_v19  ;;  %v1832_v30 = vld [vmem:[%s2059_s0 + $0x60] sm:$0xff]  ;;  %v1600_v32 = vld [vmem:[#allocation2 + $0x98] sm:$0xff]  ;;  %v1583_v35 = vld [vmem:[#allocation2 + $0x10] sm:$0xff] }
  0x11   :  { %283 = vperm.xlu0 %1623, %v38_v4   ;;  %171 = vperm.xlu2 %1625, %v38_v4   ;;  %v1589_v34 = vld [vmem:[#allocation2 + $0x40] sm:$0xff]  ;;  %v1599_v36 = vld [vmem:[#allocation2 + $0x90] sm:$0xff]  ;;  %v1582_v39 = vld [vmem:[#allocation2 + $0x8] sm:$0xff] }
  0x12   :  { %830 = vmatpush.bf16.msra.mxu2 %v1603_v20  ;;  %v1598_v40 = vld [vmem:[#allocation2 + $0x88] sm:$0xff]  ;;  %v1581_v44 = vld [vmem:[#allocation2] sm:$0xff]  ;;  %v1856_v49 = vld [vmem:[%s2059_s0 + $0x70] sm:$0xff] }
  0x13   :  { %782 = vmatpush.bf16.msra.mxu1 %v1594_v15  ;;  %v50_v41 = vld [vmem:[%s2059_s0 + $0x68] sm:$0xff]  ;;  %v1597_v45 = vld [vmem:[#allocation2 + $0x80] sm:$0xff] }
  0x14   :  { %733 = vmatpush.bf16.msra.mxu0 %v1586_v24 }
  0x16   :  { %831 = vmatpush.bf16.msra.mxu2 %v1602_v25 }
  0x17   :  { %783 = vmatpush.bf16.msra.mxu1 %v1593_v18  ;;  %v52_v18 = vld [vmem:[%s2059_s0 + $0x78] sm:$0xff] }
  0x18   :  { %1626 = vset.pattern.permute.xlu1 %v1720_v0  ;;  %734 = vmatpush.bf16.msra.mxu0 %v1585_v27 }
  0x19   :  { %286 = vperm.xlu0 %1623, %v39_v5   ;;  %289 = vperm.xlu1 %1626, %v40_v6  }
  0x1a   :  { %1627 = vset.pattern.permute.xlu2 %v1721_v1  ;;  %832 = vmatpush.bf16.msra.mxu2 %v1601_v28 }
  0x1b   :  { %62 = vperm.xlu2 %1627, %v39_v5   ;;  %784 = vmatpush.bf16.msra.mxu1 %v1592_v23 }
  0x1c   :  { %735 = vmatpush.bf16.msra.mxu0 %v1584_v31 }
  0x1e   :  { %833 = vmatpush.bf16.msra.mxu2 %v1600_v32 }
  0x1f   :  { %785 = vmatpush.bf16.msra.mxu1 %v1591_v26 }
  0x20   :  { %736 = vmatpush.bf16.msra.mxu0 %v1583_v35 }
  0x21   :  { %1628 = vset.pattern.permute.xlu0 %v1721_v1  ;;  %1629 = vset.pattern.permute.xlu1 %v1722_v2 }
  0x22   :  { %65 = vperm.xlu0 %1628, %v40_v6   ;;  %174 = vperm.xlu1 %1629, %v39_v5  }
  0x23   :  { %1630 = vset.pattern.permute.xlu2 %v1722_v2  ;;  %786 = vmatpush.bf16.msra.mxu1 %v1590_v29 }
  0x24   :  { %177 = vperm.xlu2 %1630, %v40_v6   ;;  %834 = vmatpush.bf16.msra.mxu2 %v1599_v36 }
  0x25   :  { %737 = vmatpush.bf16.msra.mxu0 %v1582_v39 }
  0x27   :  { %787 = vmatpush.bf16.msra.mxu1 %v1589_v34 }
  0x28   :  { %835 = vmatpush.bf16.msra.mxu2 %v1598_v40 }
  0x29   :  { %738 = vmatpush.bf16.msra.mxu0 %v1581_v44 }
  0x2a   :  { %68 = vperm.xlu0 %1628, %v41_v7   ;;  %1631 = vset.pattern.permute.xlu1 %v1720_v0 }
  0x2b   :  { %292 = vperm.xlu1 %1631, %v41_v7  }
  0x2c   :  { %1632 = vset.pattern.permute.xlu2 %v1720_v0  ;;  %836 = vmatpush.bf16.msra.mxu2 %v1597_v45 }
  0x2d   :  { %295 = vperm.xlu2 %1632, %v42_v8  }
  0x32   :  { %1635 = vset.pattern.permute.xlu0 %v1722_v2 }
  0x33   :  { %183 = vperm.xlu0 %1635, %v42_v8   ;;  %1633 = vset.pattern.permute.xlu1 %v1721_v1 }
  0x34   :  { %71 = vperm.xlu1 %1633, %v42_v8  }
  0x35   :  { %1634 = vset.pattern.permute.xlu2 %v1722_v2 }
  0x36   :  { %180 = vperm.xlu2 %1634, %v41_v7  }
  0x3b   :  { %186 = vperm.xlu0 %1635, %v43_v9  }
  0x3c   :  { %1636 = vset.pattern.permute.xlu1 %v1720_v0 }
  0x3d   :  { %298 = vperm.xlu1 %1636, %v43_v9  }
  0x3e   :  { %1637 = vset.pattern.permute.xlu2 %v1720_v0 }
  0x3f   :  { %301 = vperm.xlu2 %1637, %v44_v10  }
  0x43   :  { %1642 = vset.pattern.permute.xlu0 %v1720_v0 }
  0x44   :  { %307 = vperm.xlu0 %1642, %v1802_v11  }
  0x45   :  { %1638 = vset.pattern.permute.xlu1 %v1721_v1 }
  0x46   :  { %74 = vperm.xlu1 %1638, %v43_v9  }
  0x47   :  { %1639 = vset.pattern.permute.xlu2 %v1721_v1 }
  0x48   :  { %77 = vperm.xlu2 %1639, %v44_v10  }
  0x4c   :  { %310 = vperm.xlu0 %1642, %v1811_v14  }
  0x4e   :  { %1640 = vset.pattern.permute.xlu1 %v1722_v2 }
  0x4f   :  { %189 = vperm.xlu1 %1640, %v44_v10  }
  0x50   :  { %1641 = vset.pattern.permute.xlu2 %v1720_v0 }
  0x51   :  { %304 = vperm.xlu2 %1641, %v45_v21  }
  0x54   :  { %1649 = vset.pattern.permute.xlu0 %v1721_v1 }
  0x55   :  { %89 = vperm.xlu0 %1649, %v1822_v22  }
  0x57   :  { %1643 = vset.pattern.permute.xlu1 %v1721_v1 }
  0x58   :  { %80 = vperm.xlu1 %1643, %v45_v21  }
  0x59   :  { %1644 = vset.pattern.permute.xlu2 %v1721_v1 }
  0x5a   :  { %83 = vperm.xlu2 %1644, %v1802_v11  }
  0x5d   :  { %92 = vperm.xlu0 %1649, %v1832_v30  }
  0x60   :  { %1645 = vset.pattern.permute.xlu1 %v1722_v2 }
  0x61   :  { %192 = vperm.xlu1 %1645, %v45_v21  }
  0x62   :  { %1646 = vset.pattern.permute.xlu2 %v1722_v2 }
  0x63   :  { %195 = vperm.xlu2 %1646, %v1802_v11   ;;  %v169_v38 = vpop.permute.xlu2 %168 }
  0x64   :  { %vm215_vm0 = vcmp.eq.s32.totalorder %v169_v38, %v1837_v37 }
  0x65   :  { %1656 = vset.pattern.permute.xlu0 %v1722_v2  ;;  %v1421_v43 = vsel %vm215_vm0, 1.0, %v1723_v42 }
  0x66   :  { %207 = vperm.xlu0 %1656, %v50_v41   ;;  %v263_v46 = vpack.c.bf16 %v1421_v43, %v1421_v43 }
  0x68   :  { %v455_v50 = vunpack.c.l.b16 %v263_v46 }
  0x69   :  { %1647 = vset.pattern.permute.xlu1 %v1720_v0 }
  0x6a   :  { %313 = vperm.xlu1 %1647, %v1822_v22  }
  0x6b   :  { %1648 = vset.pattern.permute.xlu2 %v1721_v1  ;;  %v172_v47 = vpop.permute.xlu2 %171 }
  0x6c   :  { %86 = vperm.xlu2 %1648, %v1811_v14   ;;  %vm216_vm1 = vcmp.eq.s32.totalorder %v172_v47, %v1837_v37 }
  0x6d   :  { %v1422_v48 = vsel %vm216_vm1, 1.0, %v1723_v42 }
  0x6e   :  { %v264_v51 = vpack.c.bf16 %v1422_v48, %v1422_v48  ;;  %210 = vperm.xlu0 %1656, %v1856_v49  }
  0x70   :  { %v456_v52 = vunpack.c.l.b16 %v264_v51 }
  0x72   :  { %1650 = vset.pattern.permute.xlu1 %v1722_v2  ;;  %v471_v53 = vpack.c.b16 %v456_v52, %v455_v50 }
  0x73   :  { %198 = vperm.xlu1 %1650, %v1811_v14  }
  0x74   :  { %1651 = vset.pattern.permute.xlu2 %v1722_v2  ;;  %788 = vmatmul.bf16.vlgmr.msra.gmra.mxu1 %v471_v53 }
  0x75   :  { %201 = vperm.xlu2 %1651, %v1822_v22   ;;  %v63_v54 = vpop.permute.xlu2 %62 }
  0x76   :  { %1662 = vset.pattern.permute.xlu0 %v1720_v0  ;;  %vm105_vm8 = vcmp.eq.s32.totalorder %v63_v54, %v1837_v37 }
  0x77   :  { %v1407_v19 = vsel %vm105_vm8, 1.0, %v1723_v42 }
  0x78   :  { %v153_v23 = vpack.c.bf16 %v1407_v19, %v1407_v19 }
  0x7a   :  { %v57_v55 = vpop.permute.xlu1 %56 }
  0x7b   :  { %v281_v56 = vpop.permute.xlu0 %280  ;;  %1652 = vset.pattern.permute.xlu1 %v1720_v0  ;;  %vm103_vm3 = vcmp.eq.s32.totalorder %v57_v55, %v1837_v37 }
  0x7c   :  { %vm327_vm2 = vcmp.eq.s32.totalorder %v281_v56, %v1837_v37  ;;  %316 = vperm.xlu1 %1652, %v1832_v30   ;;  %v1405_v58 = vsel %vm103_vm3, 1.0, %v1723_v42 }
  0x7d   :  { %1653 = vset.pattern.permute.xlu2 %v1720_v0  ;;  %v1437_v57 = vsel %vm327_vm2, 1.0, %v1723_v42  ;;  %v151_v63 = vpack.c.bf16 %v1405_v58, %v1405_v58 }
  0x7e   :  { %319 = vperm.xlu2 %1653, %v50_v41   ;;  %v375_v59 = vpack.c.bf16 %v1437_v57, %v1437_v57  ;;  %v178_v60 = vpop.permute.xlu2 %177 }
  0x7f   :  { %v407_v8 = vunpack.c.l.b16 %v151_v63  ;;  %vm218_vm9 = vcmp.eq.s32.totalorder %v178_v60, %v1837_v37 }
  0x80   :  { %v503_v5 = vunpack.c.l.b16 %v375_v59  ;;  %v1424_v20 = vsel %vm218_vm9, 1.0, %v1723_v42 }
  0x81   :  { %v266_v25 = vpack.c.bf16 %v1424_v20, %v1424_v20 }
  0x82   :  { %v60_v61 = vpop.permute.xlu1 %59 }
  0x83   :  { %v284_v62 = vpop.permute.xlu0 %283  ;;  %vm104_vm4 = vcmp.eq.s32.totalorder %v60_v61, %v1837_v37  ;;  %v458_v34 = vunpack.c.l.b16 %v266_v25 }
  0x84   :  { %vm328_vm5 = vcmp.eq.s32.totalorder %v284_v62, %v1837_v37  ;;  %v1406_v3 = vsel %vm104_vm4, 1.0, %v1723_v42  ;;  %1654 = vset.pattern.permute.xlu1 %v1721_v1 }
  0x85   :  { %v1438_v4 = vsel %vm328_vm5, 1.0, %v1723_v42  ;;  %v152_v6 = vpack.c.bf16 %v1406_v3, %v1406_v3  ;;  %95 = vperm.xlu1 %1654, %v50_v41  }
  0x86   :  { %v376_v7 = vpack.c.bf16 %v1438_v4, %v1438_v4  ;;  %1655 = vset.pattern.permute.xlu2 %v1722_v2 }
  0x87   :  { %204 = vperm.xlu2 %1655, %v1832_v30   ;;  %v408_v9 = vunpack.c.l.b16 %v152_v6  ;;  %v296_v15 = vpop.permute.xlu2 %295  ;;  %v409_v30 = vunpack.c.l.b16 %v153_v23 }
  0x88   :  { %v504_v10 = vunpack.c.l.b16 %v376_v7  ;;  %vm332_vm12 = vcmp.eq.s32.totalorder %v296_v15, %v1837_v37 }
  0x89   :  { %v423_v11 = vpack.c.b16 %v408_v9, %v407_v8  ;;  %v1442_v46 = vsel %vm332_vm12, 1.0, %v1723_v42 }
  0x8a   :  { %v519_v12 = vpack.c.b16 %v504_v10, %v503_v5  ;;  %v380_v48 = vpack.c.bf16 %v1442_v46, %v1442_v46 }
  0x8b   :  { %v287_v13 = vpop.permute.xlu0 %286  ;;  %739 = vmatmul.bf16.vlgmr.msra.gmra.mxu0 %v423_v11  ;;  %v290_v14 = vpop.permute.xlu1 %289 }
  0x8c   :  { %837 = vmatmul.bf16.vlgmr.msra.gmra.mxu2 %v519_v12  ;;  %vm329_vm6 = vcmp.eq.s32.totalorder %v287_v13, %v1837_v37  ;;  %vm330_vm7 = vcmp.eq.s32.totalorder %v290_v14, %v1837_v37  ;;  %v508_v53 = vunpack.c.l.b16 %v380_v48 }
  0x8d   :  { %1657 = vset.pattern.permute.xlu1 %v1720_v0  ;;  %v1440_v16 = vsel %vm330_vm7, 1.0, %v1723_v42  ;;  %v1439_v17 = vsel %vm329_vm6, 1.0, %v1723_v42 }
  0x8e   :  { %322 = vperm.xlu1 %1657, %v1856_v49   ;;  %v378_v21 = vpack.c.bf16 %v1440_v16, %v1440_v16  ;;  %v377_v22 = vpack.c.bf16 %v1439_v17, %v1439_v17 }
  0x8f   :  { %1658 = vset.pattern.permute.xlu2 %v1720_v0 }
  0x90   :  { %325 = vperm.xlu2 %1658, %v52_v18   ;;  %v506_v27 = vunpack.c.l.b16 %v378_v21  ;;  %v505_v28 = vunpack.c.l.b16 %v377_v22  ;;  %v181_v0 = vpop.permute.xlu2 %180 }
  0x91   :  { %vm219_vm13 = vcmp.eq.s32.totalorder %v181_v0, %v1837_v37 }
  0x92   :  { %v520_v39 = vpack.c.b16 %v506_v27, %v505_v28  ;;  %v1425_v47 = vsel %vm219_vm13, 1.0, %v1723_v42 }
  0x93   :  { %v267_v51 = vpack.c.bf16 %v1425_v47, %v1425_v47 }
  0x94   :  { %v66_v24 = vpop.permute.xlu0 %65  ;;  %v175_v26 = vpop.permute.xlu1 %174 }
  0x95   :  { %vm106_vm10 = vcmp.eq.s32.totalorder %v66_v24, %v1837_v37  ;;  %vm217_vm11 = vcmp.eq.s32.totalorder %v175_v26, %v1837_v37  ;;  %v459_v58 = vunpack.c.l.b16 %v267_v51 }
  0x96   :  { %v1408_v29 = vsel %vm106_vm10, 1.0, %v1723_v42  ;;  %v1423_v32 = vsel %vm217_vm11, 1.0, %v1723_v42  ;;  %1659 = vset.pattern.permute.xlu1 %v1721_v1 }
  0x97   :  { %v154_v31 = vpack.c.bf16 %v1408_v29, %v1408_v29  ;;  %v265_v35 = vpack.c.bf16 %v1423_v32, %v1423_v32  ;;  %98 = vperm.xlu1 %1659, %v1856_v49  }
  0x98   :  { %1660 = vset.pattern.permute.xlu2 %v1721_v1 }
  0x99   :  { %v410_v36 = vunpack.c.l.b16 %v154_v31  ;;  %101 = vperm.xlu2 %1660, %v52_v18   ;;  %v457_v38 = vunpack.c.l.b16 %v265_v35  ;;  %v302_v45 = vpop.permute.xlu2 %301 }
  0x9a   :  { %vm334_vm2 = vcmp.eq.s32.totalorder %v302_v45, %v1837_v37 }
  0x9b   :  { %v424_v40 = vpack.c.b16 %v410_v36, %v409_v30  ;;  %v472_v41 = vpack.c.b16 %v458_v34, %v457_v38  ;;  %v1444_v8 = vsel %vm334_vm2, 1.0, %v1723_v42 }
  0x9c   :  { %842 = vmatmul.bf16.gmra.mxu2 %v520_v39  ;;  %v69_v43 = vpop.permute.xlu0 %68  ;;  %v382_v11 = vpack.c.bf16 %v1444_v8, %v1444_v8 }
  0x9d   :  { %744 = vmatmul.bf16.gmra.mxu0 %v424_v40  ;;  %793 = vmatmul.bf16.gmra.mxu1 %v472_v41  ;;  %v293_v44 = vpop.permute.xlu1 %292  ;;  %vm107_vm15 = vcmp.eq.s32.totalorder %v69_v43, %v1837_v37 }
  0x9e   :  { %vm331_vm14 = vcmp.eq.s32.totalorder %v293_v44, %v1837_v37  ;;  %v1409_v50 = vsel %vm107_vm15, 1.0, %v1723_v42  ;;  %v510_v15 = vunpack.c.l.b16 %v382_v11 }
  0x9f   :  { %v1441_v1 = vsel %vm331_vm14, 1.0, %v1723_v42  ;;  %1661 = vset.pattern.permute.xlu1 %v1722_v2  ;;  %v155_v55 = vpack.c.bf16 %v1409_v50, %v1409_v50 }
  0xa0   :  { %213 = vperm.xlu1 %1661, %v52_v18   ;;  %v379_v49 = vpack.c.bf16 %v1441_v1, %v1441_v1 }
  0xa1   :  { %v411_v61 = vunpack.c.l.b16 %v155_v55 }
  0xa2   :  { %v507_v54 = vunpack.c.l.b16 %v379_v49  ;;  %v78_v2 = vpop.permute.xlu2 %77 }
  0xa3   :  { %vm110_vm4 = vcmp.eq.s32.totalorder %v78_v2, %v1837_v37 }
  0xa4   :  { %v521_v3 = vpack.c.b16 %v508_v53, %v507_v54  ;;  %v1412_v14 = vsel %vm110_vm4, 1.0, %v1723_v42 }
  0xa5   :  { %v184_v52 = vpop.permute.xlu0 %183  ;;  %v158_v18 = vpack.c.bf16 %v1412_v14, %v1412_v14 }
  0xa6   :  { %vm220_vm0 = vcmp.eq.s32.totalorder %v184_v52, %v1837_v37  ;;  %v72_v57 = vpop.permute.xlu1 %71 }
  0xa7   :  { %v1426_v56 = vsel %vm220_vm0, 1.0, %v1723_v42  ;;  %vm108_vm1 = vcmp.eq.s32.totalorder %v72_v57, %v1837_v37  ;;  %v414_v23 = vunpack.c.l.b16 %v158_v18 }
  0xa8   :  { %v268_v59 = vpack.c.bf16 %v1426_v56, %v1426_v56  ;;  %v1410_v60 = vsel %vm108_vm1, 1.0, %v1723_v42 }
  0xa9   :  { %v156_v63 = vpack.c.bf16 %v1410_v60, %v1410_v60 }
  0xaa   :  { %v460_v62 = vunpack.c.l.b16 %v268_v59 }
  0xab   :  { %v412_v4 = vunpack.c.l.b16 %v156_v63  ;;  %v305_v10 = vpop.permute.xlu2 %304 }
  0xac   :  { %847 = vmatmul.bf16.gmra.mxu2 %v521_v3  ;;  %v473_v5 = vpack.c.b16 %v460_v62, %v459_v58  ;;  %vm335_vm6 = vcmp.eq.s32.totalorder %v305_v10, %v1837_v37 }
  0xad   :  { %v187_v6 = vpop.permute.xlu0 %186  ;;  %v425_v7 = vpack.c.b16 %v412_v4, %v411_v61  ;;  %v1445_v25 = vsel %vm335_vm6, 1.0, %v1723_v42 }
  0xae   :  { %798 = vmatmul.bf16.gmra.mxu1 %v473_v5  ;;  %vm221_vm8 = vcmp.eq.s32.totalorder %v187_v6, %v1837_v37  ;;  %v383_v0 = vpack.c.bf16 %v1445_v25, %v1445_v25 }
  0xaf   :  { %v299_v9 = vpop.permute.xlu1 %298  ;;  %749 = vmatmul.bf16.gmra.mxu0 %v425_v7  ;;  %v1427_v28 = vsel %vm221_vm8, 1.0, %v1723_v42 }
  0xb0   :  { %vm333_vm3 = vcmp.eq.s32.totalorder %v299_v9, %v1837_v37  ;;  %v269_v31 = vpack.c.bf16 %v1427_v28, %v1427_v28  ;;  %v511_v35 = vunpack.c.l.b16 %v383_v0 }
  0xb1   :  { %v1443_v12 = vsel %vm333_vm3, 1.0, %v1723_v42 }
  0xb2   :  { %v381_v13 = vpack.c.bf16 %v1443_v12, %v1443_v12  ;;  %v461_v39 = vunpack.c.l.b16 %v269_v31 }
  0xb4   :  { %v509_v16 = vunpack.c.l.b16 %v381_v13  ;;  %v84_v21 = vpop.permute.xlu2 %83 }
  0xb5   :  { %vm112_vm10 = vcmp.eq.s32.totalorder %v84_v21, %v1837_v37 }
  0xb6   :  { %v308_v17 = vpop.permute.xlu0 %307  ;;  %v522_v20 = vpack.c.b16 %v510_v15, %v509_v16  ;;  %v1414_v44 = vsel %vm112_vm10, 1.0, %v1723_v42 }
  0xb7   :  { %vm336_vm7 = vcmp.eq.s32.totalorder %v308_v17, %v1837_v37  ;;  %v160_v1 = vpack.c.bf16 %v1414_v44, %v1414_v44 }
  0xb8   :  { %v75_v19 = vpop.permute.xlu1 %74  ;;  %v1446_v26 = vsel %vm336_vm7, 1.0, %v1723_v42 }
  0xb9   :  { %vm109_vm5 = vcmp.eq.s32.totalorder %v75_v19, %v1837_v37  ;;  %v384_v30 = vpack.c.bf16 %v1446_v26, %v1446_v26  ;;  %v416_v49 = vunpack.c.l.b16 %v160_v1 }
  0xba   :  { %v1411_v22 = vsel %vm109_vm5, 1.0, %v1723_v42 }
  0xbb   :  { %v157_v24 = vpack.c.bf16 %v1411_v22, %v1411_v22  ;;  %v512_v36 = vunpack.c.l.b16 %v384_v30 }
  0xbc   :  { %852 = vmatmul.bf16.gmra.mxu2 %v522_v20 }
  0xbd   :  { %v413_v27 = vunpack.c.l.b16 %v157_v24  ;;  %v196_v38 = vpop.permute.xlu2 %195  ;;  %v523_v45 = vpack.c.b16 %v512_v36, %v511_v35 }
  0xbe   :  { %v311_v41 = vpop.permute.xlu0 %310  ;;  %vm224_vm12 = vcmp.eq.s32.totalorder %v196_v38, %v1837_v37 }
  0xbf   :  { %v426_v29 = vpack.c.b16 %v414_v23, %v413_v27  ;;  %v1430_v54 = vsel %vm224_vm12, 1.0, %v1723_v42  ;;  %vm337_vm0 = vcmp.eq.s32.totalorder %v311_v41, %v1837_v37 }
  0xc0   :  { %v272_v56 = vpack.c.bf16 %v1430_v54, %v1430_v54  ;;  %v1447_v5 = vsel %vm337_vm0, 1.0, %v1723_v42 }
  0xc1   :  { %v190_v32 = vpop.permute.xlu1 %189  ;;  %754 = vmatmul.bf16.gmra.mxu0 %v426_v29  ;;  %v385_v7 = vpack.c.bf16 %v1447_v5, %v1447_v5 }
  0xc2   :  { %vm222_vm9 = vcmp.eq.s32.totalorder %v190_v32, %v1837_v37  ;;  %v464_v61 = vunpack.c.l.b16 %v272_v56 }
  0xc3   :  { %v1428_v34 = vsel %vm222_vm9, 1.0, %v1723_v42  ;;  %v513_v12 = vunpack.c.l.b16 %v385_v7 }
  0xc4   :  { %v270_v40 = vpack.c.bf16 %v1428_v34, %v1428_v34 }
  0xc6   :  { %v462_v43 = vunpack.c.l.b16 %v270_v40  ;;  %v87_v51 = vpop.permute.xlu2 %86 }
  0xc7   :  { %v90_v52 = vpop.permute.xlu0 %89  ;;  %vm113_vm13 = vcmp.eq.s32.totalorder %v87_v51, %v1837_v37 }
  0xc8   :  { %v474_v46 = vpack.c.b16 %v462_v43, %v461_v39  ;;  %vm114_vm14 = vcmp.eq.s32.totalorder %v90_v52, %v1837_v37  ;;  %v1415_v58 = vsel %vm113_vm13, 1.0, %v1723_v42 }
  0xc9   :  { %v1416_v59 = vsel %vm114_vm14, 1.0, %v1723_v42  ;;  %v161_v63 = vpack.c.bf16 %v1415_v58, %v1415_v58 }
  0xca   :  { %v81_v47 = vpop.permute.xlu1 %80  ;;  %803 = vmatmul.bf16.gmra.mxu1 %v474_v46  ;;  %v162_v3 = vpack.c.bf16 %v1416_v59, %v1416_v59 }
  0xcb   :  { %vm111_vm11 = vcmp.eq.s32.totalorder %v81_v47, %v1837_v37  ;;  %v417_v8 = vunpack.c.l.b16 %v161_v63 }
  0xcc   :  { %857 = vmatmul.bf16.gmra.mxu2 %v523_v45  ;;  %v1413_v48 = vsel %vm111_vm11, 1.0, %v1723_v42  ;;  %v418_v9 = vunpack.c.l.b16 %v162_v3 }
  0xcd   :  { %v159_v50 = vpack.c.bf16 %v1413_v48, %v1413_v48 }
  0xce   :  { %v428_v14 = vpack.c.b16 %v418_v9, %v417_v8 }
  0xcf   :  { %v415_v53 = vunpack.c.l.b16 %v159_v50  ;;  %v202_v60 = vpop.permute.xlu2 %201  ;;  %v93_v16 = vpop.permute.xlu0 %92 }
  0xd0   :  { %vm226_vm2 = vcmp.eq.s32.totalorder %v202_v60, %v1837_v37  ;;  %vm115_vm8 = vcmp.eq.s32.totalorder %v93_v16, %v1837_v37 }
  0xd1   :  { %v427_v55 = vpack.c.b16 %v416_v49, %v415_v53  ;;  %v1432_v18 = vsel %vm226_vm2, 1.0, %v1723_v42  ;;  %v1417_v41 = vsel %vm115_vm8, 1.0, %v1723_v42 }
  0xd2   :  { %v274_v20 = vpack.c.bf16 %v1432_v18, %v1432_v18  ;;  %v163_v47 = vpack.c.bf16 %v1417_v41, %v1417_v41 }
  0xd3   :  { %v193_v57 = vpop.permute.xlu1 %192  ;;  %759 = vmatmul.bf16.gmra.mxu0 %v427_v55 }
  0xd4   :  { %vm223_vm15 = vcmp.eq.s32.totalorder %v193_v57, %v1837_v37  ;;  %v466_v23 = vunpack.c.l.b16 %v274_v20  ;;  %v419_v51 = vunpack.c.l.b16 %v163_v47 }
  0xd5   :  { %v1429_v2 = vsel %vm223_vm15, 1.0, %v1723_v42 }
  0xd6   :  { %v271_v62 = vpack.c.bf16 %v1429_v2, %v1429_v2 }
  0xd8   :  { %v463_v4 = vunpack.c.l.b16 %v271_v62  ;;  %v320_v15 = vpop.permute.xlu2 %319  ;;  %v208_v26 = vpop.permute.xlu0 %207 }
  0xd9   :  { %vm340_vm4 = vcmp.eq.s32.totalorder %v320_v15, %v1837_v37  ;;  %vm228_vm6 = vcmp.eq.s32.totalorder %v208_v26, %v1837_v37 }
  0xda   :  { %v475_v6 = vpack.c.b16 %v464_v61, %v463_v4  ;;  %v1450_v28 = vsel %vm340_vm4, 1.0, %v1723_v42  ;;  %v1434_v32 = vsel %vm228_vm6, 1.0, %v1723_v42  ;;  %v1968_v61 = vld [vmem:[%s2061_s2] ss:$0 sm:$0xff]  ;;  %vm1299_vm4 = vcmask 1041409  }
  0xdb   :  { %v388_v0 = vpack.c.bf16 %v1450_v28, %v1450_v28  ;;  %v276_v39 = vpack.c.bf16 %v1434_v32, %v1434_v32 }
  0xdc   :  { %v314_v10 = vpop.permute.xlu1 %313  ;;  %808 = vmatmul.bf16.gmra.mxu1 %v475_v6  ;;  %v1972_v6 = vshrl.u32 %v53_v33, 7 }
  0xdd   :  { %vm338_vm1 = vcmp.eq.s32.totalorder %v314_v10, %v1837_v37  ;;  %v516_v35 = vunpack.c.l.b16 %v388_v0  ;;  %v468_v46 = vunpack.c.l.b16 %v276_v39 }
  0xde   :  { %v1448_v11 = vsel %vm338_vm1, 1.0, %v1723_v42  ;;  %v896_v20 = vadd.s32 8, %v1972_v6  ;;  %v897_v39 = vadd.s32 16, %v1972_v6 }
  0xdf   :  { %v386_v13 = vpack.c.bf16 %v1448_v11, %v1448_v11 }
  0xe0   :  { %v211_v9 = vpop.permute.xlu0 %210  ;;  %v922_v0 = vand.u32 7, %v896_v20  ;;  %v929_v47 = vand.u32 7, %v897_v39 }
  0xe1   :  { %v514_v17 = vunpack.c.l.b16 %v386_v13  ;;  %v205_v25 = vpop.permute.xlu2 %204  ;;  %vm229_vm14 = vcmp.eq.s32.totalorder %v211_v9, %v1837_v37 }
  0xe2   :  { %vm227_vm5 = vcmp.eq.s32.totalorder %v205_v25, %v1837_v37  ;;  %vm1104_vm1 = vcmp.lt.s32.totalorder %v922_v0, 6  ;;  %vm1105_vm2 = vcmp.lt.s32.totalorder %v929_v47, 6 }
  0xe3   :  { %764 = vmatmul.bf16.gmra.mxu0 %v428_v14  ;;  %v524_v19 = vpack.c.b16 %v514_v17, %v513_v12  ;;  %v1433_v31 = vsel %vm227_vm5, 1.0, %v1723_v42  ;;  %v915_v14 = vand.u32 7, %v1972_v6  ;;  %v1435_v17 = vsel %vm229_vm14, 1.0, %v1723_v42 }
  0xe4   :  { %v275_v38 = vpack.c.bf16 %v1433_v31, %v1433_v31  ;;  %v277_v25 = vpack.c.bf16 %v1435_v17, %v1435_v17  ;;  %vm1301_vm5 = vcmask 1042434   ;;  %vm1311_vm14 = vcmask 1047559  }
  0xe5   :  { %v199_v21 = vpop.permute.xlu1 %198  ;;  %862 = vmatmul.bf16.gmra.mxu2 %v524_v19  ;;  %vm1103_vm15 = vcmp.lt.s32.totalorder %v915_v14, 6 }
  0xe6   :  { %vm225_vm3 = vcmp.eq.s32.totalorder %v199_v21, %v1837_v37  ;;  %v467_v45 = vunpack.c.l.b16 %v275_v38 }
  0xe7   :  { %v1431_v22 = vsel %vm225_vm3, 1.0, %v1723_v42 }
  0xe8   :  { %v273_v24 = vpack.c.bf16 %v1431_v22, %v1431_v22  ;;  %v477_v50 = vpack.c.b16 %v468_v46, %v467_v45 }
  0xea   :  { %v465_v27 = vunpack.c.l.b16 %v273_v24  ;;  %v326_v44 = vpop.permute.xlu2 %325 }
  0xeb   :  { %vm342_vm10 = vcmp.eq.s32.totalorder %v326_v44, %v1837_v37 }
  0xec   :  { %v476_v29 = vpack.c.b16 %v466_v23, %v465_v27  ;;  %v1452_v53 = vsel %vm342_vm10, 1.0, %v1723_v42 }
  0xed   :  { %v390_v55 = vpack.c.bf16 %v1452_v53, %v1452_v53  ;;  %v898_v53 = vadd.s32 24, %v1972_v6 }
  0xee   :  { %v317_v30 = vpop.permute.xlu1 %316  ;;  %813 = vmatmul.bf16.gmra.mxu1 %v476_v29 }
  0xef   :  { %vm339_vm7 = vcmp.eq.s32.totalorder %v317_v30, %v1837_v37  ;;  %v518_v59 = vunpack.c.l.b16 %v390_v55 }
  0xf0   :  { %v1449_v34 = vsel %vm339_vm7, 1.0, %v1723_v42  ;;  %vm1303_vm7 = vcmask 1043459  }
  0xf1   :  { %v387_v36 = vpack.c.bf16 %v1449_v34, %v1449_v34  ;;  %v789_v3 = vpop.f32.mrf.mxu1  ;;  %v469_v34 = vunpack.c.l.b16 %v277_v25 }
  0xf3   :  { %v515_v40 = vunpack.c.l.b16 %v387_v36  ;;  %v102_v56 = vpop.permute.xlu2 %101 }
  0xf4   :  { %vm118_vm12 = vcmp.eq.s32.totalorder %v102_v56, %v1837_v37 }
  0xf5   :  { %v525_v43 = vpack.c.b16 %v516_v35, %v515_v40  ;;  %v1420_v62 = vsel %vm118_vm12, 1.0, %v1723_v42 }
  0xf6   :  { %v166_v5 = vpack.c.bf16 %v1420_v62, %v1420_v62 }
  0xf7   :  { %v96_v1 = vpop.permute.xlu1 %95  ;;  %867 = vmatmul.bf16.gmra.mxu2 %v525_v43 }
  0xf8   :  { %vm116_vm9 = vcmp.eq.s32.totalorder %v96_v1, %v1837_v37  ;;  %v422_v12 = vunpack.c.l.b16 %v166_v5 }
  0xf9   :  { %v1418_v48 = vsel %vm116_vm9, 1.0, %v1723_v42  ;;  %v791_v23 = vpop.f32.mrf.mxu1  ;;  %vm1305_vm9 = vcmask 1044484  }
  0xfa   :  { %v164_v49 = vpack.c.bf16 %v1418_v48, %v1418_v48 }
  0xfc   :  { %v420_v52 = vunpack.c.l.b16 %v164_v49 }
  0xfe   :  { %818 = vmatmul.bf16.gmra.mxu1 %v477_v50  ;;  %v429_v54 = vpack.c.b16 %v420_v52, %v419_v51 }
 0x100   :  { %v323_v57 = vpop.permute.xlu1 %322  ;;  %769 = vmatmul.bf16.gmra.mxu0 %v429_v54 }
 0x101   :  { %vm341_vm11 = vcmp.eq.s32.totalorder %v323_v57, %v1837_v37 }
 0x102   :  { %v1451_v58 = vsel %vm341_vm11, 1.0, %v1723_v42  ;;  %vm1307_vm11 = vcmask 1045509  }
 0x103   :  { %v389_v2 = vpack.c.bf16 %v1451_v58, %v1451_v58 }
 0x105   :  { %v517_v60 = vunpack.c.l.b16 %v389_v2 }
 0x107   :  { %v526_v63 = vpack.c.b16 %v518_v59, %v517_v60 }
 0x108   :  { %v740_v4 = vpop.f32.mrf.mxu0 }
 0x109   :  { %v741_v7 = vadd.f32 %v1968_v61, %v740_v4  ;;  %v99_v8 = vpop.permute.xlu1 %98  ;;  %872 = vmatmul.bf16.gmra.mxu2 %v526_v63 }
 0x10a   :  { %vm117_vm13 = vcmp.eq.s32.totalorder %v99_v8, %v1837_v37 }
 0x10b   :  { %v1419_v10 = vsel %vm117_vm13, 1.0, %v1723_v42  ;;  %v790_v11 = vadd.f32 %v789_v3, %v741_v7  ;;  %v936_v3 = vand.u32 7, %v898_v53  ;;  %vm1309_vm13 = vcmask 1046534  }
 0x10c   :  { %v165_v13 = vpack.c.bf16 %v1419_v10, %v1419_v10 }
 0x10d   :  { %vm1106_vm3 = vcmp.lt.s32.totalorder %v936_v3, 6 }
 0x10e   :  { %v421_v15 = vunpack.c.l.b16 %v165_v13 }
 0x10f   :  { %v838_v16 = vpop.f32.mrf.mxu2 }
 0x110   :  { %v839_v33 = vadd.f32 %v838_v16, %v790_v11  ;;  %v742_v18 = vpop.f32.mrf.mxu0  ;;  %v430_v19 = vpack.c.b16 %v422_v12, %v421_v15  ;;  %v899_v16 = vadd.s32 32, %v1972_v6 }
 0x111   :  { %v743_v22 = vadd.f32 %v1968_v61, %v742_v18 }
 0x112   :  { %v878_v21 = vmax.f32 %v839_v33, 0.0  ;;  %v214_v24 = vpop.permute.xlu1 %213  ;;  %774 = vmatmul.bf16.gmra.mxu0 %v430_v19 }
 0x113   :  { %vm230_vm0 = vcmp.eq.s32.totalorder %v214_v24, %v1837_v37  ;;  %v792_v27 = vadd.f32 %v791_v23, %v743_v22 }
 0x114   :  { %v1119_v26 = vsel %vm1103_vm15, %v878_v21, 0.0  ;;  %v1436_v29 = vsel %vm230_vm0, 1.0, %v1723_v42 }
 0x115   :  { %v1135_v28 = vrot.slane %v1119_v26, 4  ;;  %v278_v30 = vpack.c.bf16 %v1436_v29, %v1436_v29 }
 0x117   :  { %v1136_v31 = vmax.f32 %v1119_v26, %v1135_v28  ;;  %v840_v32 = vpop.f32.mrf.mxu2  ;;  %v470_v35 = vunpack.c.l.b16 %v278_v30  ;;  %v943_v26 = vand.u32 7, %v899_v16 }
 0x118   :  { %v841_v36 = vadd.f32 %v840_v32, %v792_v27  ;;  %v900_v32 = vadd.s32 40, %v1972_v6 }
 0x119   :  { %v1137_v38 = vrot.slane %v1136_v31, 2  ;;  %v478_v43 = vpack.c.b16 %v470_v35, %v469_v34  ;;  %vm1107_vm6 = vcmp.lt.s32.totalorder %v943_v26, 6 }
 0x11a   :  { %v879_v40 = vmax.f32 %v841_v36, 0.0  ;;  %v745_v41 = vpop.f32.mrf.mxu0  ;;  %v794_v45 = vpop.f32.mrf.mxu1 }
 0x11b   :  { %v1138_v44 = vmax.f32 %v1136_v31, %v1137_v38  ;;  %v746_v37 = vadd.f32 %v1968_v61, %v745_v41  ;;  %823 = vmatmul.bf16.gmra.mxu1 %v478_v43 }
 0x11c   :  { %v1120_v46 = vsel %vm1104_vm1, %v879_v40, 0.0 }
 0x11d   :  { %v1141_v42 = vrot.slane %v1120_v46, 4  ;;  %v795_v1 = vadd.f32 %v794_v45, %v746_v37  ;;  %v1139_v48 = vrot.slane %v1138_v44, 1  ;;  %v950_v37 = vand.u32 7, %v900_v32 }
 0x11f   :  { %v1142_v49 = vmax.f32 %v1120_v46, %v1141_v42  ;;  %v843_v50 = vpop.f32.mrf.mxu2  ;;  %v1140_v56 = vmax.f32 %v1138_v44, %v1139_v48  ;;  %vm1108_vm8 = vcmp.lt.s32.totalorder %v950_v37, 6 }
 0x120   :  { %v844_v51 = vadd.f32 %v843_v50, %v795_v1 }
 0x121   :  { %v1143_v52 = vrot.slane %v1142_v49, 2  ;;  %v1231_v4 = vpack.c.bf16 %v1140_v56, %v1140_v56 }
 0x122   :  { %v880_v54 = vmax.f32 %v844_v51, 0.0  ;;  %v747_v55 = vpop.f32.mrf.mxu0  ;;  %v796_v59 = vpop.f32.mrf.mxu1 }
 0x123   :  { %v1144_v57 = vmax.f32 %v1142_v49, %v1143_v52  ;;  %v748_v58 = vadd.f32 %v1968_v61, %v747_v55  ;;  %v1283_v13 = vunpack.c.l.b16 %v1231_v4 }
 0x124   :  { %v1121_v2 = vsel %vm1105_vm2, %v880_v54, 0.0 }
 0x125   :  { %v1145_v60 = vrot.slane %v1144_v57, 1  ;;  %v1147_v62 = vrot.slane %v1121_v2, 4  ;;  %v797_v63 = vadd.f32 %v796_v59, %v748_v58 }
 0x127   :  { %v1146_v5 = vmax.f32 %v1144_v57, %v1145_v60  ;;  %v1148_v7 = vmax.f32 %v1121_v2, %v1147_v62  ;;  %v845_v8 = vpop.f32.mrf.mxu2  ;;  %v901_v60 = vadd.s32 48, %v1972_v6 }
 0x128   :  { %v846_v9 = vadd.f32 %v845_v8, %v797_v63 }
 0x129   :  { %v1232_v10 = vpack.c.bf16 %v1146_v5, %v1146_v5  ;;  %v1149_v11 = vrot.slane %v1148_v7, 2 }
 0x12a   :  { %v881_v12 = vmax.f32 %v846_v9, 0.0  ;;  %v957_v9 = vand.u32 7, %v901_v60 }
 0x12b   :  { %v1284_v14 = vunpack.c.l.b16 %v1232_v10  ;;  %v1150_v15 = vmax.f32 %v1148_v7, %v1149_v11  ;;  %v799_v20 = vpop.f32.mrf.mxu1 }
 0x12c   :  { %v1122_v33 = vsel %vm1106_vm3, %v881_v12, 0.0  ;;  %v750_v21 = vpop.f32.mrf.mxu0  ;;  %vm1109_vm10 = vcmp.lt.s32.totalorder %v957_v9, 6 }
 0x12d   :  { %v1300_v17 = vsel %vm1299_vm4, %v1284_v14, %v1283_v13  ;;  %v1151_v18 = vrot.slane %v1150_v15, 1  ;;  %v1153_v19 = vrot.slane %v1122_v33, 4  ;;  %v751_v22 = vadd.f32 %v1968_v61, %v750_v21 }
 0x12f   :  { %v1152_v23 = vmax.f32 %v1150_v15, %v1151_v18  ;;  %v1154_v24 = vmax.f32 %v1122_v33, %v1153_v19  ;;  %v848_v25 = vpop.f32.mrf.mxu2  ;;  %v800_v27 = vadd.f32 %v799_v20, %v751_v22  ;;  %v902_v15 = vadd.s32 56, %v1972_v6 }
 0x131   :  { %v1233_v28 = vpack.c.bf16 %v1152_v23, %v1152_v23  ;;  %v1155_v29 = vrot.slane %v1154_v24, 2  ;;  %v849_v0 = vadd.f32 %v848_v25, %v800_v27  ;;  %v964_v22 = vand.u32 7, %v902_v15 }
 0x132   :  { %v906_v15 = vadd.s32 88, %v1972_v6 }
 0x133   :  { %v1285_v30 = vunpack.c.l.b16 %v1233_v28  ;;  %v1156_v31 = vmax.f32 %v1154_v24, %v1155_v29  ;;  %v882_v34 = vmax.f32 %v849_v0, 0.0  ;;  %v801_v44 = vpop.f32.mrf.mxu1  ;;  %vm1110_vm12 = vcmp.lt.s32.totalorder %v964_v22, 6 }
 0x134   :  { %v752_v38 = vpop.f32.mrf.mxu0 }
 0x135   :  { %v1302_v35 = vsel %vm1301_vm5, %v1285_v30, %v1300_v17  ;;  %v1157_v36 = vrot.slane %v1156_v31, 1  ;;  %v1123_v39 = vsel %vm1107_vm6, %v882_v34, 0.0  ;;  %v753_v40 = vadd.f32 %v1968_v61, %v752_v38 }
 0x136   :  { %v1159_v43 = vrot.slane %v1123_v39, 4 }
 0x137   :  { %v1158_v41 = vmax.f32 %v1156_v31, %v1157_v36  ;;  %v802_v45 = vadd.f32 %v801_v44, %v753_v40  ;;  %v850_v1 = vpop.f32.mrf.mxu2 }
 0x138   :  { %v1160_v42 = vmax.f32 %v1123_v39, %v1159_v43 }
 0x139   :  { %v1234_v46 = vpack.c.bf16 %v1158_v41, %v1158_v41  ;;  %v851_v47 = vadd.f32 %v850_v1, %v802_v45 }
 0x13a   :  { %v1161_v49 = vrot.slane %v1160_v42, 2 }
 0x13b   :  { %v1286_v48 = vunpack.c.l.b16 %v1234_v46  ;;  %v883_v50 = vmax.f32 %v851_v47, 0.0 }
 0x13c   :  { %v1162_v51 = vmax.f32 %v1160_v42, %v1161_v49 }
 0x13d   :  { %v1304_v52 = vsel %vm1303_vm7, %v1286_v48, %v1302_v35  ;;  %v1124_v53 = vsel %vm1108_vm8, %v883_v50, 0.0 }
 0x13e   :  { %v1163_v54 = vrot.slane %v1162_v51, 1  ;;  %v1165_v55 = vrot.slane %v1124_v53, 4  ;;  %v755_v58 = vpop.f32.mrf.mxu0 }
 0x13f   :  { %v756_v4 = vadd.f32 %v1968_v61, %v755_v58  ;;  %v853_v7 = vpop.f32.mrf.mxu2 }
 0x140   :  { %v1164_v56 = vmax.f32 %v1162_v51, %v1163_v54  ;;  %v1166_v57 = vmax.f32 %v1124_v53, %v1165_v55 }
 0x142   :  { %v1235_v59 = vpack.c.bf16 %v1164_v56, %v1164_v56  ;;  %v1167_v2 = vrot.slane %v1166_v57, 2  ;;  %v1612_v56 = vld [vmem:[%s2062_s3 + $0x38] sm:$0xff] }
 0x143   :  { %1370 = vmatpush.bf16.msra.mxu3 %v1612_v56  ;;  %v1605_v56 = vld [vmem:[%s2062_s3] sm:$0xff] }
 0x144   :  { %v1287_v62 = vunpack.c.l.b16 %v1235_v59  ;;  %v1168_v63 = vmax.f32 %v1166_v57, %v1167_v2  ;;  %v1611_v59 = vld [vmem:[%s2062_s3 + $0x30] sm:$0xff] }
 0x146   :  { %v1169_v3 = vrot.slane %v1168_v63, 1  ;;  %v1306_v5 = vsel %vm1305_vm9, %v1287_v62, %v1304_v52  ;;  %v757_v14 = vpop.f32.mrf.mxu0 }
 0x147   :  { %v804_v8 = vpop.f32.mrf.mxu1  ;;  %v758_v17 = vadd.f32 %v1968_v61, %v757_v14  ;;  %v855_v24 = vpop.f32.mrf.mxu2  ;;  %1371 = vmatpush.bf16.msra.mxu3 %v1611_v59  ;;  %v903_v14 = vadd.s32 64, %v1972_v6 }
 0x148   :  { %v1170_v10 = vmax.f32 %v1168_v63, %v1169_v3  ;;  %v805_v11 = vadd.f32 %v804_v8, %v756_v4  ;;  %v1610_v3 = vld [vmem:[%s2062_s3 + $0x28] sm:$0xff]  ;;  %v904_v8 = vadd.s32 72, %v1972_v6 }
 0x14a   :  { %v1236_v12 = vpack.c.bf16 %v1170_v10, %v1170_v10  ;;  %v854_v13 = vadd.f32 %v853_v7, %v805_v11  ;;  %v905_v11 = vadd.s32 80, %v1972_v6 }
 0x14b   :  { %1372 = vmatpush.bf16.msra.mxu3 %v1610_v3 }
 0x14c   :  { %v1288_v16 = vunpack.c.l.b16 %v1236_v12  ;;  %v884_v33 = vmax.f32 %v854_v13, 0.0 }
 0x14e   :  { %v1125_v18 = vsel %vm1109_vm10, %v884_v33, 0.0  ;;  %v1308_v19 = vsel %vm1307_vm11, %v1288_v16, %v1306_v5 }
 0x14f   :  { %v1171_v20 = vrot.slane %v1125_v18, 4  ;;  %v806_v21 = vpop.f32.mrf.mxu1  ;;  %v858_v40 = vpop.f32.mrf.mxu2 }
 0x150   :  { %v807_v23 = vadd.f32 %v806_v21, %v758_v17  ;;  %v760_v32 = vpop.f32.mrf.mxu0  ;;  %v1609_v17 = vld [vmem:[%s2062_s3 + $0x20] sm:$0xff]  ;;  %v978_v21 = vand.u32 7, %v904_v8 }
 0x151   :  { %v1172_v25 = vmax.f32 %v1125_v18, %v1171_v20  ;;  %v761_v4 = vadd.f32 %v1968_v61, %v760_v32  ;;  %1373 = vmatpush.bf16.msra.mxu3 %v1609_v17 }
 0x152   :  { %v856_v26 = vadd.f32 %v855_v24, %v807_v23  ;;  %v908_v24 = vadd.s32 104, %v1972_v6  ;;  %vm1112_vm15 = vcmp.lt.s32.totalorder %v978_v21, 6 }
 0x153   :  { %v1173_v27 = vrot.slane %v1172_v25, 2 }
 0x154   :  { %v885_v28 = vmax.f32 %v856_v26, 0.0  ;;  %v985_v26 = vand.u32 7, %v905_v11 }
 0x155   :  { %v1174_v29 = vmax.f32 %v1172_v25, %v1173_v27 }
 0x156   :  { %v1126_v0 = vsel %vm1110_vm12, %v885_v28, 0.0  ;;  %v971_v28 = vand.u32 7, %v903_v14  ;;  %vm1113_vm0 = vcmp.lt.s32.totalorder %v985_v26, 6 }
 0x157   :  { %v1175_v30 = vrot.slane %v1174_v29, 1  ;;  %v1177_v31 = vrot.slane %v1126_v0, 4  ;;  %v860_v48 = vpop.f32.mrf.mxu2 }
 0x158   :  { %v762_v45 = vpop.f32.mrf.mxu0  ;;  %vm1111_vm1 = vcmp.lt.s32.totalorder %v971_v28, 6 }
 0x159   :  { %v1176_v34 = vmax.f32 %v1174_v29, %v1175_v30  ;;  %v1178_v35 = vmax.f32 %v1126_v0, %v1177_v31  ;;  %v809_v36 = vpop.f32.mrf.mxu1  ;;  %v763_v62 = vadd.f32 %v1968_v61, %v762_v45  ;;  %v992_v29 = vand.u32 7, %v906_v15  ;;  %v1608_v31 = vld [vmem:[%s2062_s3 + $0x18] sm:$0xff] }
 0x15a   :  { %v810_v10 = vadd.f32 %v809_v36, %v761_v4  ;;  %1374 = vmatpush.bf16.msra.mxu3 %v1608_v31 }
 0x15b   :  { %v1179_v38 = vrot.slane %v1178_v35, 2  ;;  %v1237_v39 = vpack.c.bf16 %v1176_v34, %v1176_v34  ;;  %vm1114_vm2 = vcmp.lt.s32.totalorder %v992_v29, 6 }
 0x15c   :  { %v859_v25 = vadd.f32 %v858_v40, %v810_v10 }
 0x15d   :  { %v1180_v41 = vmax.f32 %v1178_v35, %v1179_v38  ;;  %v1289_v43 = vunpack.c.l.b16 %v1237_v39  ;;  %v1006_v38 = vand.u32 7, %v908_v24 }
 0x15e   :  { %v886_v39 = vmax.f32 %v859_v25, 0.0 }
 0x15f   :  { %v1181_v44 = vrot.slane %v1180_v41, 1  ;;  %v1310_v37 = vsel %vm1309_vm13, %v1289_v43, %v1308_v19  ;;  %v907_v19 = vadd.s32 96, %v1972_v6  ;;  %v1607_v43 = vld [vmem:[%s2062_s3 + $0x10] sm:$0xff]  ;;  %vm1116_vm6 = vcmp.lt.s32.totalorder %v1006_v38, 6 }
 0x160   :  { %v765_v50 = vpop.f32.mrf.mxu0  ;;  %1375 = vmatpush.bf16.msra.mxu3 %v1607_v43 }
 0x161   :  { %v1182_v46 = vmax.f32 %v1180_v41, %v1181_v44  ;;  %v811_v42 = vpop.f32.mrf.mxu1  ;;  %v766_v2 = vadd.f32 %v1968_v61, %v765_v50  ;;  %v999_v34 = vand.u32 7, %v907_v19 }
 0x162   :  { %v812_v5 = vadd.f32 %v811_v42, %v763_v62  ;;  %v1127_v42 = vsel %vm1111_vm1, %v886_v39, 0.0 }
 0x163   :  { %v1238_v1 = vpack.c.bf16 %v1182_v46, %v1182_v46  ;;  %vm1115_vm3 = vcmp.lt.s32.totalorder %v999_v34, 6  ;;  %v1606_v46 = vld [vmem:[%s2062_s3 + $0x8] sm:$0xff] }
 0x164   :  { %v861_v18 = vadd.f32 %v860_v48, %v812_v5  ;;  %1376 = vmatpush.bf16.msra.mxu3 %v1606_v46 }
 0x165   :  { %v1290_v47 = vunpack.c.l.b16 %v1238_v1 }
 0x166   :  { %v887_v32 = vmax.f32 %v861_v18, 0.0 }
 0x167   :  { %v2003_v49 = vsel %vm1311_vm14, %v1290_v47, %v1310_v37 }
 0x168   :  { %v863_v52 = vpop.f32.mrf.mxu2  ;;  %v767_v54 = vpop.f32.mrf.mxu0  ;;  %v1128_v44 = vsel %vm1112_vm15, %v887_v32, 0.0  ;;  %1377 = vmatpush.bf16.msra.mxu3 %v1605_v56 }
 0x169   :  { %v768_v7 = vadd.f32 %v1968_v61, %v767_v54  ;;  %v1189_v47 = vrot.slane %v1128_v44, 4 }
 0x16b   :  { %v814_v51 = vpop.f32.mrf.mxu1 }
 0x16c   :  { %v815_v9 = vadd.f32 %v814_v51, %v766_v2 }
 0x16e   :  { %v864_v22 = vadd.f32 %v863_v52, %v815_v9 }
 0x170   :  { %v865_v55 = vpop.f32.mrf.mxu2  ;;  %v888_v36 = vmax.f32 %v864_v22, 0.0 }
 0x172   :  { %v1129_v45 = vsel %vm1113_vm0, %v888_v36, 0.0 }
 0x173   :  { %v816_v53 = vpop.f32.mrf.mxu1  ;;  %v1195_v51 = vrot.slane %v1129_v45, 4 }
 0x174   :  { %v817_v12 = vadd.f32 %v816_v53, %v768_v7  ;;  %v1183_v53 = vrot.slane %v1127_v42, 4 }
 0x175   :  { %v1196_v2 = vmax.f32 %v1129_v45, %v1195_v51 }
 0x176   :  { %v866_v27 = vadd.f32 %v865_v55, %v817_v12  ;;  %v909_v55 = vadd.s32 112, %v1972_v6  ;;  %v1184_v62 = vmax.f32 %v1127_v42, %v1183_v53 }
 0x177   :  { %v1197_v11 = vrot.slane %v1196_v2, 2 }
 0x178   :  { %v889_v40 = vmax.f32 %v866_v27, 0.0  ;;  %v1013_v5 = vand.u32 7, %v909_v55 }
 0x17a   :  { %v868_v60 = vpop.f32.mrf.mxu2  ;;  %v1130_v1 = vsel %vm1114_vm2, %v889_v40, 0.0  ;;  %vm1117_vm8 = vcmp.lt.s32.totalorder %v1013_v5, 6 }
 0x17b   :  { %v819_v57 = vpop.f32.mrf.mxu1  ;;  %v1201_v54 = vrot.slane %v1130_v1, 4 }
 0x17d   :  { %v770_v58 = vpop.f32.mrf.mxu0 }
 0x17e   :  { %v771_v63 = vadd.f32 %v1968_v61, %v770_v58  ;;  %v1190_v58 = vmax.f32 %v1128_v44, %v1189_v47 }
 0x180   :  { %v820_v16 = vadd.f32 %v819_v57, %v771_v63  ;;  %v1202_v63 = vmax.f32 %v1130_v1, %v1201_v54  ;;  %v1191_v9 = vrot.slane %v1190_v58, 2 }
 0x182   :  { %v869_v0 = vadd.f32 %v868_v60, %v820_v16  ;;  %v870_v30 = vpop.f32.mrf.mxu2  ;;  %v1203_v14 = vrot.slane %v1202_v63, 2  ;;  %v910_v16 = vadd.s32 120, %v1972_v6  ;;  %v1192_v18 = vmax.f32 %v1190_v58, %v1191_v9 }
 0x183   :  { %v821_v20 = vpop.f32.mrf.mxu1 }
 0x184   :  { %v890_v41 = vmax.f32 %v869_v0, 0.0  ;;  %v1204_v24 = vmax.f32 %v1202_v63, %v1203_v14  ;;  %v1020_v27 = vand.u32 7, %v910_v16  ;;  %v1193_v0 = vrot.slane %v1192_v18, 1 }
 0x185   :  { %v772_v13 = vpop.f32.mrf.mxu0 }
 0x186   :  { %v773_v33 = vadd.f32 %v1968_v61, %v772_v13  ;;  %v1131_v48 = vsel %vm1115_vm3, %v890_v41, 0.0  ;;  %v1185_v13 = vrot.slane %v1184_v62, 2  ;;  %v1205_v36 = vrot.slane %v1204_v24, 1 }
 0x187   :  { %v1207_v57 = vrot.slane %v1131_v48, 4  ;;  %vm1118_vm10 = vcmp.lt.s32.totalorder %v1020_v27, 6  ;;  %v1194_v40 = vmax.f32 %v1192_v18, %v1193_v0 }
 0x188   :  { %v822_v23 = vadd.f32 %v821_v20, %v773_v33  ;;  %v1198_v20 = vmax.f32 %v1196_v2, %v1197_v11  ;;  %v1206_v46 = vmax.f32 %v1204_v24, %v1205_v36 }
 0x189   :  { %v1208_v7 = vmax.f32 %v1131_v48, %v1207_v57  ;;  %v1240_v48 = vpack.c.bf16 %v1194_v40, %v1194_v40 }
 0x18a   :  { %v871_v35 = vadd.f32 %v870_v30, %v822_v23  ;;  %v1186_v23 = vmax.f32 %v1184_v62, %v1185_v13  ;;  %v1199_v6 = vrot.slane %v1198_v20, 1  ;;  %v1242_v55 = vpack.c.bf16 %v1206_v46, %v1206_v46 }
 0x18b   :  { %v1209_v33 = vrot.slane %v1208_v7, 2  ;;  %v1292_v58 = vunpack.c.l.b16 %v1240_v48 }
 0x18c   :  { %v891_v37 = vmax.f32 %v871_v35, 0.0  ;;  %v873_v3 = vpop.f32.mrf.mxu2  ;;  %v1187_v35 = vrot.slane %v1186_v23, 1  ;;  %v1200_v44 = vmax.f32 %v1198_v20, %v1199_v6 }
 0x18d   :  { %v1210_v28 = vmax.f32 %v1208_v7, %v1209_v33 }
 0x18e   :  { %v1132_v52 = vsel %vm1116_vm6, %v891_v37, 0.0  ;;  %v1188_v45 = vmax.f32 %v1186_v23, %v1187_v35 }
 0x18f   :  { %v775_v50 = vpop.f32.mrf.mxu0  ;;  %v1213_v59 = vrot.slane %v1132_v52, 4  ;;  %v1211_v39 = vrot.slane %v1210_v28, 1 }
 0x190   :  { %v776_v60 = vadd.f32 %v1968_v61, %v775_v50  ;;  %v1239_v54 = vpack.c.bf16 %v1188_v45, %v1188_v45 }
 0x191   :  { %v1214_v10 = vmax.f32 %v1132_v52, %v1213_v59  ;;  %v1212_v47 = vmax.f32 %v1210_v28, %v1211_v39  ;;  %v1241_v52 = vpack.c.bf16 %v1200_v44, %v1200_v44 }
 0x192   :  { %v1291_v63 = vunpack.c.l.b16 %v1239_v54 }
 0x193   :  { %v1215_v19 = vrot.slane %v1214_v10, 2  ;;  %v1243_v57 = vpack.c.bf16 %v1212_v47, %v1212_v47 }
 0x194   :  { %v875_v31 = vpop.f32.mrf.mxu2  ;;  %v1313_v7 = vsel %vm1299_vm4, %v1292_v58, %v1291_v63 }
 0x195   :  { %v1216_v30 = vmax.f32 %v1214_v10, %v1215_v19  ;;  %v1295_v5 = vunpack.c.l.b16 %v1243_v57  ;;  %v1664_v19 = vld [vmem:[%s2063_s4] ss:$0 sm:$0xff] }
 0x197   :  { %v777_v15 = vpop.f32.mrf.mxu0  ;;  %v1217_v41 = vrot.slane %v1216_v30, 1 }
 0x198   :  { %v824_v4 = vpop.f32.mrf.mxu1  ;;  %v778_v21 = vadd.f32 %v1968_v61, %v777_v15 }
 0x199   :  { %v825_v8 = vadd.f32 %v824_v4, %v776_v60  ;;  %v1218_v50 = vmax.f32 %v1216_v30, %v1217_v41  ;;  %v1293_v60 = vunpack.c.l.b16 %v1241_v52 }
 0x19b   :  { %v874_v12 = vadd.f32 %v873_v3, %v825_v8  ;;  %v1244_v2 = vpack.c.bf16 %v1218_v50, %v1218_v50  ;;  %v1294_v3 = vunpack.c.l.b16 %v1242_v55  ;;  %v1314_v11 = vsel %vm1301_vm5, %v1293_v60, %v1313_v7 }
 0x19d   :  { %v892_v17 = vmax.f32 %v874_v12, 0.0  ;;  %v1296_v9 = vunpack.c.l.b16 %v1244_v2  ;;  %v1315_v13 = vsel %vm1303_vm7, %v1294_v3, %v1314_v11 }
 0x19e   :  { %v1316_v14 = vsel %vm1305_vm9, %v1295_v5, %v1315_v13 }
 0x19f   :  { %v1133_v22 = vsel %vm1117_vm8, %v892_v17, 0.0  ;;  %v1317_v16 = vsel %vm1307_vm11, %v1296_v9, %v1316_v14 }
 0x1a0   :  { %v1219_v25 = vrot.slane %v1133_v22, 4  ;;  %v826_v26 = vpop.f32.mrf.mxu1 }
 0x1a1   :  { %v827_v29 = vadd.f32 %v826_v26, %v778_v21 }
 0x1a2   :  { %v1220_v32 = vmax.f32 %v1133_v22, %v1219_v25 }
 0x1a3   :  { %v876_v34 = vadd.f32 %v875_v31, %v827_v29 }
 0x1a4   :  { %v1221_v38 = vrot.slane %v1220_v32, 2 }
 0x1a5   :  { %v893_v61 = vmax.f32 %v876_v34, 0.0 }
 0x1a6   :  { %v1222_v43 = vmax.f32 %v1220_v32, %v1221_v38 }
 0x1a7   :  { %v1134_v37 = vsel %vm1118_vm10, %v893_v61, 0.0 }
 0x1a8   :  { %v1223_v42 = vrot.slane %v1222_v43, 1  ;;  %v1225_v1 = vrot.slane %v1134_v37, 4 }
 0x1aa   :  { %v1226_v51 = vmax.f32 %v1134_v37, %v1225_v1  ;;  %v1224_v53 = vmax.f32 %v1222_v43, %v1223_v42 }
 0x1ac   :  { %v1227_v56 = vrot.slane %v1226_v51, 2  ;;  %v1245_v62 = vpack.c.bf16 %v1224_v53, %v1224_v53 }
 0x1ae   :  { %v1228_v59 = vmax.f32 %v1226_v51, %v1227_v56  ;;  %v1297_v10 = vunpack.c.l.b16 %v1245_v62 }
 0x1b0   :  { %v1229_v4 = vrot.slane %v1228_v59, 1  ;;  %v1318_v33 = vsel %vm1309_vm13, %v1297_v10, %v1317_v16 }
 0x1b2   :  { %v1230_v8 = vmax.f32 %v1228_v59, %v1229_v4 }
 0x1b4   :  { %v1246_v12 = vpack.c.bf16 %v1230_v8, %v1230_v8 }
 0x1b6   :  { %v1298_v15 = vunpack.c.l.b16 %v1246_v12 }
 0x1b8   :  { %v1319_v17 = vsel %vm1311_vm14, %v1298_v15, %v1318_v33 }
 0x1b9   :  { %v1320_v18 = vpack.c.b16 %v1319_v17, %v2003_v49 }
 0x1bb   :  { %1378 = vmatmul.bf16.vlgmr.msra.gmra.mxu3 %v1320_v18 }
 0x23e   :  { %v1379_v20 = vpop.f32.mrf.mxu3 }
 0x23f   :  { %v1380_v21 = vadd.f32 %v1664_v19, %v1379_v20 }
 0x241   :  { %1384 = vst [vmem:[#allocation5] sm:$0xff] %v1380_v21 }
 0x246   :  { %v1381_v22 = vpop.f32.mrf.mxu3 }
 0x247   :  { %v1382_v23 = vadd.f32 %v1664_v19, %v1381_v22 }
 0x249   :  { %1385 = vst [vmem:[#allocation5 + $0x8] sm:$0xff] %v1382_v23 }
 0x24a   :  { %1398 = dma.vmem_to_hbm [thread:$0]  %s1391_s23, 256, %s1393_s1, [#allocation4], %s1725_s26, %s1725_s26, %s1726_s27  }
 0x24b   :  { %1715 = dma.done.wait [#allocation4], 256  }
 0x24c   :  { %1716 = vsyncadd [#allocation4], 4294967040 }
 0x24d   :  { %1403 = vsyncpa [#allocation3], 1 }
 0x24e   :  { %1404 = vsyncpa [#allocation4], 1 }

</bundles_post_ra>
